<compile_context>
chip_gen: v7x
topology: tpu7x:2x2x1
jax: 0.10.0
libtpu: 0.0.40
codegen_flags: <defaults>
</compile_context>

<pallas_src>
import jax
import jax.numpy as jnp
from jax.experimental import pallas as pl
from jax.experimental.pallas import tpu as pltpu

BN_EPS = 1e-5


def branch_decoder_kernel(x_ref, w1_ref, b1_ref, gamma_ref, beta_ref,
                          w2_ref, b2_ref, out_ref):
    """One decoder head: Linear -> BN(train) -> ReLU -> Linear -> exp on sigma half.

    Per grid step (head):
      x_ref:     (B, F_in) bf16     w1_ref: (F_in, H) bf16    b1_ref:   (1, H) f32
      gamma_ref: (1, H)   f32       beta_ref: (1, H)  f32
      w2_ref:    (H, H)   bf16      b2_ref:   (1, H)  f32
      out_ref:   (B, H)   f32, H = 2*latent_dim;
                 columns [0, D) = mu, [D, H) = sigma = exp(log_sigma).
    """
    # --- Linear 1 (MXU, bf16 inputs, f32 accumulation) ---
    h = jnp.dot(x_ref[...], w1_ref[...],
                preferred_element_type=jnp.float32) + b1_ref[...]

    # --- BatchNorm1d, training mode: full-batch mean, biased variance (f32) ---
    inv_n = 1.0 / h.shape[0]
    mean = jnp.sum(h, axis=0, keepdims=True) * inv_n            # (1, H)
    diff = h - mean
    var = jnp.sum(diff * diff, axis=0, keepdims=True) * inv_n    # biased, as BN train
    inv_std = jax.lax.rsqrt(var + BN_EPS)
    hn = diff * inv_std * gamma_ref[...] + beta_ref[...]

    # --- ReLU (VPU) ---
    r = jnp.maximum(hn, 0.0)

    # --- Linear 2 (MXU) ---
    out = jnp.dot(r.astype(w2_ref.dtype), w2_ref[...],
                  preferred_element_type=jnp.float32) + b2_ref[...]

    # --- Fused AxisAlignedConvGaussian: sigma = exp(log_sigma) on second half ---
    B, H = out.shape
    col = jax.lax.broadcasted_iota(jnp.int32, (B, H), 1)
    out = jnp.where(col >= H // 2, jnp.exp(out), out)   # exp -> EUP slot (free here)

    out_ref[...] = out.astype(out_ref.dtype)             # lane-dense (H=128) store


def branch_decoder_forward(x, params, *, use_bf16=True):
    """Fused forward for N decoder heads in one pallas_call.

    x:      (B, F_in) float32 latent input, shared by all heads.
    params: stacked per-head params:
        w1 (N, F_in, H), b1 (N, H), gamma (N, H), beta (N, H), w2 (N, H, H), b2 (N, H)
        with H = 2 * latent_dim (stochastic=True).
    Returns (mu, sigma): each (N, B, latent_dim) float32; sigma already exp'd.
    """
    B, F_in = x.shape
    N, _, H = params["w1"].shape
    D = H // 2
    mxu_dt = jnp.bfloat16 if use_bf16 else jnp.float32
    itemsize = 2 if use_bf16 else 4

    # MXU operands in bf16 (halves DMA bytes); small per-feature params stay f32.
    x_in = x.astype(mxu_dt)
    w1 = params["w1"].astype(mxu_dt)
    w2 = params["w2"].astype(mxu_dt)
    b1 = params["b1"].reshape(N, 1, H).astype(jnp.float32)
    gamma = params["gamma"].reshape(N, 1, H).astype(jnp.float32)
    beta = params["beta"].reshape(N, 1, H).astype(jnp.float32)
    b2 = params["b2"].reshape(N, 1, H).astype(jnp.float32)

    # Per-head block: leading head dim squeezed out of the kernel view.
    def head(shape):
        return pl.BlockSpec((None,) + shape, lambda n: (n,) + (0,) * len(shape))

    cost = pl.CostEstimate(
        flops=N * (2 * B * F_in * H + 2 * B * H * H + 10 * B * H),
        transcendentals=N * (B * H + H),               # exp + rsqrt
        bytes_accessed=(x_in.size * itemsize
                        + (w1.size + w2.size) * itemsize
                        + (b1.size + gamma.size + beta.size + b2.size) * 4
                        + N * B * H * 4),
    )

    out = pl.pallas_call(
        branch_decoder_kernel,
        out_shape=jax.ShapeDtypeStruct((N, B, H), jnp.float32),
        grid=(N,),
        in_specs=[
            pl.BlockSpec((B, F_in), lambda n: (0, 0)),   # shared latent input
            head((F_in, H)),                             # w1
            head((1, H)),                                # b1
            head((1, H)),                                # gamma
            head((1, H)),                                # beta
            head((H, H)),                                # w2
            head((1, H)),                                # b2
        ],
        out_specs=head((B, H)),
        compiler_params=pltpu.CompilerParams(
            dimension_semantics=("parallel",)),          # heads independent (v7x 2 TCs)
        cost_estimate=cost,
    )(x_in, w1, b1, gamma, beta, w2, b2)

    mu = out[:, :, :D]
    sigma = out[:, :, D:]          # exp already applied in-kernel
    return mu, sigma


def init_params(key, n_heads, input_dim, latent_dim, stochastic=True):
    """Deterministic synthetic parameter init matching the PyTorch module shapes."""
    H = latent_dim * 2 if stochastic else latent_dim
    k1, k2, k3, k4 = jax.random.split(key, 4)
    lim1 = (6.0 / (input_dim + H)) ** 0.5
    lim2 = (6.0 / (H + H)) ** 0.5
    return {
        "w1": jax.random.uniform(k1, (n_heads, input_dim, H), jnp.float32, -lim1, lim1),
        "b1": jax.random.uniform(k2, (n_heads, H), jnp.float32, -0.1, 0.1),
        "gamma": jnp.ones((n_heads, H), jnp.float32),   # BatchNorm1d default affine
        "beta": jnp.zeros((n_heads, H), jnp.float32),
        "w2": jax.random.uniform(k3, (n_heads, H, H), jnp.float32, -lim2, lim2),
        "b2": jax.random.uniform(k4, (n_heads, H), jnp.float32, -0.1, 0.1),
    }


def reference_forward(x, params, *, use_bf16=True):
    """Plain-JAX reference mirroring the kernel's numeric recipe (bf16 MXU, f32 acc)."""
    mxu_dt = jnp.bfloat16 if use_bf16 else jnp.float32
    N, _, H = params["w1"].shape
    D = H // 2
    xs = x.astype(mxu_dt)
    mus, sigmas = [], []
    for n in range(N):
        h = jnp.dot(xs, params["w1"][n].astype(mxu_dt),
                    preferred_element_type=jnp.float32) + params["b1"][n]
        mean = jnp.mean(h, axis=0, keepdims=True)
        diff = h - mean
        var = jnp.mean(diff * diff, axis=0, keepdims=True)       # biased (BN train)
        hn = diff * jax.lax.rsqrt(var + BN_EPS) * params["gamma"][n] + params["beta"][n]
        r = jnp.maximum(hn, 0.0)
        out = jnp.dot(r.astype(mxu_dt), params["w2"][n].astype(mxu_dt),
                      preferred_element_type=jnp.float32) + params["b2"][n]
        mus.append(out[:, :D])
        sigmas.append(jnp.exp(out[:, D:]))
    return jnp.stack(mus), jnp.stack(sigmas)


if __name__ == "__main__":
    key = jax.random.PRNGKey(0)
    kx, kp = jax.random.split(key)

    n_heads = 2        # two decoder branches batched into a single pallas_call
    batch = 8
    input_dim = 32     # latent-variable feature dim fed to the branch decoder
    latent_dim = 64    # -> H = 2*latent_dim = 128 features: lane-dense output

    x = jax.random.normal(kx, (batch, input_dim), dtype=jnp.float32)
    params = init_params(kp, n_heads, input_dim, latent_dim, stochastic=True)

    mu, sigma = branch_decoder_forward(x, params, use_bf16=True)
    mu, sigma = jax.block_until_ready((mu, sigma))

    mu_ref, sigma_ref = reference_forward(x, params, use_bf16=True)

    assert mu.shape == (n_heads, batch, latent_dim)
    assert sigma.shape == (n_heads, batch, latent_dim)
    assert jnp.allclose(mu, mu_ref, atol=5e-3, rtol=5e-3), "mu mismatch vs reference"
    assert jnp.allclose(sigma, sigma_ref, atol=5e-3, rtol=5e-3), "sigma mismatch vs reference"
    assert bool(jnp.all(sigma > 0))

    # TODO(synk): torch.distributions Independent(Normal(mu, sigma)) and
    # rsample()/sample(), plus BatchNorm1d running-stat updates, have no Pallas
    # equivalent; (mu, sigma) fully parameterize the latent Normal and sampling is
    # mu + sigma * jax.random.normal(...) at the JAX level.

    print("KERNEL_OK")
</pallas_src>

<mosaic_0001>
module attributes {stable_mosaic.version = 11 : i64} {
  func.func @branch_decoder_kernel(%arg0: i32, %arg1: memref<8x32xbf16, #tpu.memory_space<vmem>>, %arg2: memref<1x32x128xbf16, #tpu.memory_space<vmem>>, %arg3: memref<1x1x128xf32, #tpu.memory_space<vmem>>, %arg4: memref<1x1x128xf32, #tpu.memory_space<vmem>>, %arg5: memref<1x1x128xf32, #tpu.memory_space<vmem>>, %arg6: memref<1x128x128xbf16, #tpu.memory_space<vmem>>, %arg7: memref<1x1x128xf32, #tpu.memory_space<vmem>>, %arg8: memref<1x8x128xf32, #tpu.memory_space<vmem>>) attributes {dimension_semantics = [#tpu.dimension_semantics<parallel>], iteration_bounds = array<i64: 2>, scalar_prefetch = 0 : i64, scratch_operands = 0 : i64, tpu.core_type = #tpu.core_type<tc>, window_params = [{pipeline_mode = #tpu.pipeline_mode<synchronous>, transform_indices = @transform_0, window_bounds = array<i64: 8, 32>}, {transform_indices = @transform_1, window_bounds = array<i64: 1, 32, 128>}, {transform_indices = @transform_2, window_bounds = array<i64: 1, 1, 128>}, {transform_indices = @transform_3, window_bounds = array<i64: 1, 1, 128>}, {transform_indices = @transform_4, window_bounds = array<i64: 1, 1, 128>}, {transform_indices = @transform_5, window_bounds = array<i64: 1, 128, 128>}, {transform_indices = @transform_6, window_bounds = array<i64: 1, 1, 128>}, {transform_indices = @transform_7, window_bounds = array<i64: 1, 8, 128>}]} {
    %c0 = arith.constant 0 : index
    %c0_0 = arith.constant 0 : index
    %0 = vector.load %arg1[%c0, %c0_0] : memref<8x32xbf16, #tpu.memory_space<vmem>>, vector<8x32xbf16>
    %c0_1 = arith.constant 0 : index
    %c0_2 = arith.constant 0 : index
    %c0_3 = arith.constant 0 : index
    %1 = vector.load %arg2[%c0_1, %c0_2, %c0_3] : memref<1x32x128xbf16, #tpu.memory_space<vmem>>, vector<1x32x128xbf16>
    %2 = vector.shape_cast %1 : vector<1x32x128xbf16> to vector<32x128xbf16>
    %cst = arith.constant dense<0.000000e+00> : vector<8x128xf32>
    %3 = tpu.matmul %0, %2, %cst {dimension_numbers = #tpu.dot_dimension_numbers<[1], [0], [0], [1], [0, 0, 1, 1], [], []>} : vector<8x32xbf16>, vector<32x128xbf16>, vector<8x128xf32> -> vector<8x128xf32>
    %c0_4 = arith.constant 0 : index
    %c0_5 = arith.constant 0 : index
    %c0_6 = arith.constant 0 : index
    %4 = vector.load %arg3[%c0_4, %c0_5, %c0_6] : memref<1x1x128xf32, #tpu.memory_space<vmem>>, vector<1x1x128xf32>
    %5 = vector.shape_cast %4 : vector<1x1x128xf32> to vector<1x128xf32>
    %6 = vector.broadcast %5 : vector<1x128xf32> to vector<8x128xf32>
    %7 = arith.addf %3, %6 : vector<8x128xf32>
    %cst_7 = arith.constant dense<0.000000e+00> : vector<128xf32>
    %8 = vector.multi_reduction <add>, %7, %cst_7 [0] : vector<8x128xf32> to vector<128xf32>
    %9 = vector.shape_cast %8 : vector<128xf32> to vector<1x128xf32>
    %cst_8 = arith.constant 1.250000e-01 : f32
    %10 = vector.broadcast %cst_8 : f32 to vector<1x128xf32>
    %11 = arith.mulf %9, %10 : vector<1x128xf32>
    %12 = vector.broadcast %11 : vector<1x128xf32> to vector<8x128xf32>
    %13 = arith.subf %7, %12 : vector<8x128xf32>
    %14 = arith.mulf %13, %13 : vector<8x128xf32>
    %cst_9 = arith.constant dense<0.000000e+00> : vector<128xf32>
    %15 = vector.multi_reduction <add>, %14, %cst_9 [0] : vector<8x128xf32> to vector<128xf32>
    %16 = vector.shape_cast %15 : vector<128xf32> to vector<1x128xf32>
    %cst_10 = arith.constant 1.250000e-01 : f32
    %17 = vector.broadcast %cst_10 : f32 to vector<1x128xf32>
    %18 = arith.mulf %16, %17 : vector<1x128xf32>
    %cst_11 = arith.constant 9.99999974E-6 : f32
    %19 = vector.broadcast %cst_11 : f32 to vector<1x128xf32>
    %20 = arith.addf %18, %19 : vector<1x128xf32>
    %21 = math.rsqrt %20 : vector<1x128xf32>
    %22 = vector.broadcast %21 : vector<1x128xf32> to vector<8x128xf32>
    %23 = arith.mulf %13, %22 : vector<8x128xf32>
    %c0_12 = arith.constant 0 : index
    %c0_13 = arith.constant 0 : index
    %c0_14 = arith.constant 0 : index
    %24 = vector.load %arg4[%c0_12, %c0_13, %c0_14] : memref<1x1x128xf32, #tpu.memory_space<vmem>>, vector<1x1x128xf32>
    %25 = vector.shape_cast %24 : vector<1x1x128xf32> to vector<1x128xf32>
    %26 = vector.broadcast %25 : vector<1x128xf32> to vector<8x128xf32>
    %27 = arith.mulf %23, %26 : vector<8x128xf32>
    %c0_15 = arith.constant 0 : index
    %c0_16 = arith.constant 0 : index
    %c0_17 = arith.constant 0 : index
    %28 = vector.load %arg5[%c0_15, %c0_16, %c0_17] : memref<1x1x128xf32, #tpu.memory_space<vmem>>, vector<1x1x128xf32>
    %29 = vector.shape_cast %28 : vector<1x1x128xf32> to vector<1x128xf32>
    %30 = vector.broadcast %29 : vector<1x128xf32> to vector<8x128xf32>
    %31 = arith.addf %27, %30 : vector<8x128xf32>
    %cst_18 = arith.constant 0.000000e+00 : f32
    %32 = vector.broadcast %cst_18 : f32 to vector<8x128xf32>
    %33 = arith.maximumf %31, %32 : vector<8x128xf32>
    %34 = arith.truncf %33 : vector<8x128xf32> to vector<8x128xbf16>
    %c0_19 = arith.constant 0 : index
    %c0_20 = arith.constant 0 : index
    %c0_21 = arith.constant 0 : index
    %35 = vector.load %arg6[%c0_19, %c0_20, %c0_21] : memref<1x128x128xbf16, #tpu.memory_space<vmem>>, vector<1x128x128xbf16>
    %36 = vector.shape_cast %35 : vector<1x128x128xbf16> to vector<128x128xbf16>
    %cst_22 = arith.constant dense<0.000000e+00> : vector<8x128xf32>
    %37 = tpu.matmul %34, %36, %cst_22 {dimension_numbers = #tpu.dot_dimension_numbers<[1], [0], [0], [1], [0, 0, 1, 1], [], []>} : vector<8x128xbf16>, vector<128x128xbf16>, vector<8x128xf32> -> vector<8x128xf32>
    %c0_23 = arith.constant 0 : index
    %c0_24 = arith.constant 0 : index
    %c0_25 = arith.constant 0 : index
    %38 = vector.load %arg7[%c0_23, %c0_24, %c0_25] : memref<1x1x128xf32, #tpu.memory_space<vmem>>, vector<1x1x128xf32>
    %39 = vector.shape_cast %38 : vector<1x1x128xf32> to vector<1x128xf32>
    %40 = vector.broadcast %39 : vector<1x128xf32> to vector<8x128xf32>
    %41 = arith.addf %37, %40 : vector<8x128xf32>
    %42 = tpu.iota {dimensions = array<i32: 1>} : vector<8x128xi32>
    %c64_i32 = arith.constant 64 : i32
    %43 = vector.broadcast %c64_i32 : i32 to vector<8x128xi32>
    %44 = arith.cmpi sge, %42, %43 : vector<8x128xi32>
    %45 = math.exp %41 : vector<8x128xf32>
    %46 = arith.select %44, %45, %41 : vector<8x128xi1>, vector<8x128xf32>
    %c0_26 = arith.constant 0 : index
    %c0_27 = arith.constant 0 : index
    %c0_28 = arith.constant 0 : index
    %47 = vector.load %arg8[%c0_26, %c0_27, %c0_28] : memref<1x8x128xf32, #tpu.memory_space<vmem>>, vector<1x8x128xf32>
    %48 = vector.shape_cast %47 : vector<1x8x128xf32> to vector<8x128xf32>
    %49 = vector.shape_cast %46 : vector<8x128xf32> to vector<1x8x128xf32>
    tpu.vector_store %arg8[%c0_26, %c0_27, %c0_28], %49 {strides = array<i32>} : memref<1x8x128xf32, #tpu.memory_space<vmem>>, vector<1x8x128xf32>,
    return
  }
  func.func @transform_0(%arg0: i32) -> (i32, i32) {
    %c0_i32 = arith.constant 0 : i32
    %c0_i32_0 = arith.constant 0 : i32
    %c0_i32_1 = arith.constant 0 : i32
    return %c0_i32, %c0_i32_0 : i32, i32
  }
  func.func @transform_1(%arg0: i32) -> (i32, i32, i32) {
    %c0_i32 = arith.constant 0 : i32
    %c0_i32_0 = arith.constant 0 : i32
    %c0_i32_1 = arith.constant 0 : i32
    return %arg0, %c0_i32, %c0_i32_0 : i32, i32, i32
  }
  func.func @transform_2(%arg0: i32) -> (i32, i32, i32) {
    %c0_i32 = arith.constant 0 : i32
    %c0_i32_0 = arith.constant 0 : i32
    %c0_i32_1 = arith.constant 0 : i32
    return %arg0, %c0_i32, %c0_i32_0 : i32, i32, i32
  }
  func.func @transform_3(%arg0: i32) -> (i32, i32, i32) {
    %c0_i32 = arith.constant 0 : i32
    %c0_i32_0 = arith.constant 0 : i32
    %c0_i32_1 = arith.constant 0 : i32
    return %arg0, %c0_i32, %c0_i32_0 : i32, i32, i32
  }
  func.func @transform_4(%arg0: i32) -> (i32, i32, i32) {
    %c0_i32 = arith.constant 0 : i32
    %c0_i32_0 = arith.constant 0 : i32
    %c0_i32_1 = arith.constant 0 : i32
    return %arg0, %c0_i32, %c0_i32_0 : i32, i32, i32
  }
  func.func @transform_5(%arg0: i32) -> (i32, i32, i32) {
    %c0_i32 = arith.constant 0 : i32
    %c0_i32_0 = arith.constant 0 : i32
    %c0_i32_1 = arith.constant 0 : i32
    return %arg0, %c0_i32, %c0_i32_0 : i32, i32, i32
  }
  func.func @transform_6(%arg0: i32) -> (i32, i32, i32) {
    %c0_i32 = arith.constant 0 : i32
    %c0_i32_0 = arith.constant 0 : i32
    %c0_i32_1 = arith.constant 0 : i32
    return %arg0, %c0_i32, %c0_i32_0 : i32, i32, i32
  }
  func.func @transform_7(%arg0: i32) -> (i32, i32, i32) {
    %c0_i32 = arith.constant 0 : i32
    %c0_i32_0 = arith.constant 0 : i32
    %c0_i32_1 = arith.constant 0 : i32
    return %arg0, %c0_i32, %c0_i32_0 : i32, i32, i32
  }
}

</mosaic_0001>

<bundles_post_ra>
// kernel: tpu_custom_call.1
= control target key start
LH: loop header
LB: loop body
LE: loop exit
PB: predicated region body
PF: predicated region fallthrough
CT: control target
= control target key end

     0   :  { %s1411_s0 = inlined_call_operand.hbm [shape: bf16[8,32], index: 0, kind: input, shape index: {}]   ;;  %s1412_s1 = inlined_call_operand.hbm [shape: bf16[2,32,128], index: 1, kind: input, shape index: {}]   ;;  %s1413_s2 = inlined_call_operand.vmem [shape: f32[2,1,128], index: 2, kind: input, shape index: {}]   ;;  %s1414_s3 = inlined_call_operand.vmem [shape: f32[2,1,128], index: 3, kind: input, shape index: {}]   ;;  %s1415_s4 = inlined_call_operand.vmem [shape: f32[2,1,128], index: 4, kind: input, shape index: {}]   ;;  %s1416_s5 = inlined_call_operand.hbm [shape: bf16[2,128,128], index: 5, kind: input, shape index: {}]   ;;  %s1417_s6 = inlined_call_operand.vmem [shape: f32[2,1,128], index: 6, kind: input, shape index: {}]   ;;  %s1418_s7 = inlined_call_operand.hbm [shape: f32[2,8,128], index: 7, kind: output, shape index: {}]  }
   0x1   :  { %1425 = sst [smem:[#allocation13_spill]] %s1412_s1 }
   0x2   :  { %1426 = sst [smem:[#allocation14_spill]] %s1416_s5 }
   0x3   :  { %12 = vsyncpa [#allocation3], 0 }
   0x4   :  { %13 = vsyncpa [#allocation6], 0 }
   0x5   :  { %15 = vsyncpa [#allocation6 + $0x1], 0 }
   0x6   :  { %16 = vsyncpa [#allocation4], 0 }
   0x7   :  { %18 = vsyncpa [#allocation4 + $0x1], 0  ;;  %s1143_s24 = smov 0   ;;  %s1145_s25 = smov 0  }
   0x8   :  { %s1147_s26 = smov 0   ;;  %s1149_s27 = smov 0  }
   0x9 LB: > { %s1164_s28 = sadd.s32 1, %s1093_s27   ;;  %s52_s29 = sadd.s32 1, %s1089_s26  ;;  %s1093_s27 = sphi %s1149_s27, %s1449_s27   ;;  %s1089_s26 = sphi %s1147_s26, %s1448_s26   ;;  %s1085_s25 = sphi %s1145_s25, %s1447_s25   ;;  %s1081_s24 = sphi %s1143_s24, %s1446_s24  }
   0xa   : > { %s49_s30 = ssub.s32 %s1093_s27, %s1164_s28  ;;  %p59_p0 = scmp.ne.s32.totalorder %s1089_s26, %s1085_s25 }
   0xb   : > { %p50_p1 = scmp.eq.s32.totalorder %s49_s30, 0  ;;  %p60_p2 = scmp.eq.s32.totalorder %s1093_s27, 0 }
   0xc   : > { %p881_p4 = scmp.lt.s32.totalorder %s1093_s27, 2  ;;  %s256_s9 = sand.u32 1, %s1093_s27  }
   0xd   : > { %s1175_s8 = scalar_select %p50_p1, %s1089_s26, %s52_s29  }
   0xe   : > { %p61_p5 = por %p60_p2, %p59_p0  ;;  %s258_s10 = sand.u32 1, %s1089_s26  }
   0xf   : > { %1427 = sst [smem:[#allocation12_spill]] %s1175_s8  ;;  %s783_s11 = sshll.u32 %s258_s10, 4 }
  0x10   : > { %s813_s12 = sshll.u32 %s1093_s27, 8  ;;  %s1428_s1 = sld [smem:[#allocation13_spill]] }
  0x11   : > { %s260_s16 = scalar_lea.vmem [#allocation5], %s783_s11  ;;  %p1190_p6 = pnand %p881_p4, %p61_p5 }
  0x12   : > { %s267_s17 = sshll.u32 %s260_s16, 4  ;;  %s1196_s19 = scalar_lea.sflag [#allocation6], %s256_s9  ;;  %s1194_s17 = int_to_ptr.vmem [resolvable:$true] %s267_s17 }
  0x13   : > { %p937_p8 = pneg %p1190_p6 }
  0x16   : > { %s1188_s15 = scalar_lea.hbm %s1428_s1, %s813_s12  ;;  %s940_s23 = scalar_lea.hbm %s1428_s1, 512 }
  0x17   : > { %s935_s20 = scalar_lea.hbm %s1188_s15, 256  ;;  %p941_p11 = scmp.lt.u32.totalorder %s1188_s15, %s1428_s1 }
  0x18   : > { %p936_p7 = scmp.ne.s32.totalorder %s1188_s15, %s935_s20  ;;  %p942_p12 = scmp.lt.u32.totalorder %s940_s23, %s935_s20 }
  0x19   : > { %p944_p1 = scmp.lt.u32.totalorder %s935_s20, %s1188_s15 }
  0x1a   : > { %p938_p9 = pnand %p937_p8, %p936_p7  ;;  %p943_p13 = por %p942_p12, %p941_p11 }
  0x1c   : > { %p939_p10 = pneg %p938_p9  ;;  %p945_p2 = por %p944_p1, %p943_p13 }
  0x1e   : > { %p946_p4 = pnand %p945_p2, %p939_p10 }
  0x20   : > { %949 = shalt.err (!%p946_p4)
}
  0x21   : > { %s950_s9 = scalar_lea.vmem %s1194_s17, 256  ;;  %s1095_s11 = smov [#allocation5]  }
  0x22   : > { %p951_p5 = scmp.ne.s32.totalorder %s1194_s17, %s950_s9  ;;  %s955_s12 = sshll.u32 %s1095_s11, 4  ;;  %s956_s12 = int_to_ptr.vmem [resolvable:$false] %s955_s12 }
  0x23   : > { %s957_s13 = scalar_lea.vmem %s956_s12, 512  ;;  %p958_p3 = scmp.lt.s32.totalorder %s1194_s17, %s956_s12 }
  0x24   : > { %p953_p7 = pnand %p951_p5, %p937_p8  ;;  %p959_p11 = scmp.lt.s32.totalorder %s957_s13, %s950_s9 }
  0x26   : > { %p954_p9 = pneg %p953_p7  ;;  %p960_p12 = por %p959_p11, %p958_p3 }
  0x28   : > { %p961_p13 = pnand %p960_p12, %p954_p9 }
  0x2a   : > { %964 = shalt.err (!%p961_p13)
}
  0x2b   : > { %s1419_s14 = smov 64   ;;  %s1420_s16 = smov 4  }
  0x2c   : > { %872 = dma.hbm_to_vmem [thread:$0]  (!%p1190_p6), %s1188_s15, 256, %s1194_s17, %s1196_s19, %s1419_s14, %s1419_s14, %s1420_s16  }
  0x2d   : > { %s786_s20 = sshll.u32 %s258_s10, 6  ;;  %s1230_s21 = sadd.s32 4294967295, %s1093_s27  }
  0x2e   : > { %s779_s22 = sadd.s32 4294967294, %s1093_s27   ;;  %p65_p3 = scmp.ne.s32.totalorder %s1085_s25, %s1081_s24 }
  0x2f   : > { %p1421_p10 = scmp.eq.s32.totalorder %s1230_s21, 0  ;;  %p219_p1 = scmp.eq.s32.totalorder %s1230_s21, 1 }
  0x30   : > { %p225_p2 = scmp.eq.s32.totalorder %s779_s22, 1  ;;  %p780_p4 = scmp.ge.s32.totalorder %s1093_s27, 1 }
  0x31   : > { %p1240_p5 = por %p1421_p10, %p65_p3  ;;  %p1247_p7 = por %p219_p1, %p59_p0 }
  0x32   : > { %p1251_p9 = por %p225_p2, %p65_p3  ;;  %p232_p11 = scmp.lt.s32.totalorder %s1093_s27, 3 }
  0x33   : > { %s1430_s23 = scalar_select %p1240_p5, 1, 0 }
  0x34   : > { %s1431_s10 = scalar_select %p1247_p7, 1, 0 }
  0x35   : > { %s1432_s15 = scalar_select %p1251_p9, 1, 0 }
  0x36   : > { %s299_s17 = scalar_lea.vmem [#allocation7], %s786_s20  ;;  %p1256_p12 = pnand %p780_p4, %p232_p11 }
  0x37   : > { %s306_s29 = sshll.u32 %s299_s17, 4  ;;  %s1098_s9 = smov [#allocation2]   ;;  %s1268_s29 = int_to_ptr.vmem [resolvable:$true] %s306_s29 }
  0x38   : > { %s1433_s30 = scalar_select %p1256_p12, 1, 0 }
  0x39   : > { %s245_s11 = sshll.u32 %s1098_s9, 4  ;;  %s814_s12 = sshll.u32 %s1093_s27, 10  ;;  %s1270_s11 = int_to_ptr.vmem [resolvable:$true] %s245_s11 }
  0x3a   : > { %p865_p0 = pneg %p1256_p12  ;;  %s1434_s5 = sld [smem:[#allocation14_spill]] }
  0x3c   : > { %p1274_p13 = pnand %p865_p0, %p1421_p10 }
  0x40   : > { %s1266_s14 = scalar_lea.hbm %s1434_s5, %s814_s12  ;;  %s970_s13 = scalar_lea.hbm %s1434_s5, 2048 }
  0x41   : > { %s965_s17 = scalar_lea.hbm %s1266_s14, 1024  ;;  %p971_p4 = scmp.lt.u32.totalorder %s1266_s14, %s1434_s5 }
  0x42   : > { %p966_p3 = scmp.ne.s32.totalorder %s1266_s14, %s965_s17  ;;  %p972_p11 = scmp.lt.u32.totalorder %s970_s13, %s965_s17 }
  0x43   : > { %p974_p0 = scmp.lt.u32.totalorder %s965_s17, %s1266_s14 }
  0x44   : > { %p968_p1 = pnand %p966_p3, %p937_p8  ;;  %p973_p9 = por %p972_p11, %p971_p4 }
  0x46   : > { %p969_p2 = pneg %p968_p1  ;;  %p975_p10 = por %p974_p0, %p973_p9 }
  0x48   : > { %p976_p7 = pnand %p975_p10, %p969_p2 }
  0x4a   : > { %979 = shalt.err (!%p976_p7)
}
  0x4b   : > { %s980_s1 = scalar_lea.vmem %s1268_s29, 1024  ;;  %s1099_s9 = smov [#allocation7]  }
  0x4c   : > { %p981_p3 = scmp.ne.s32.totalorder %s1268_s29, %s980_s1  ;;  %s985_s12 = sshll.u32 %s1099_s9, 4  ;;  %s986_s12 = int_to_ptr.vmem [resolvable:$false] %s985_s12 }
  0x4d   : > { %s987_s16 = scalar_lea.vmem %s986_s12, 2048  ;;  %p988_p12 = scmp.lt.s32.totalorder %s1268_s29, %s986_s12 }
  0x4e   : > { %p983_p1 = pnand %p981_p3, %p937_p8  ;;  %p989_p4 = scmp.lt.s32.totalorder %s987_s16, %s980_s1 }
  0x50   : > { %p984_p5 = pneg %p983_p1  ;;  %p990_p11 = por %p989_p4, %p988_p12 }
  0x52   : > { %p991_p9 = pnand %p990_p11, %p984_p5 }
  0x54   : > { %994 = shalt.err (!%p991_p9)
}
  0x55   : > { %s1436_s17 = smov 4   ;;  %s1437_s13 = smov 64  }
  0x56   : > { %875 = dma.hbm_to_vmem [thread:$0]  (!%p1190_p6), %s1266_s14, 1024, %s1268_s29, %s1196_s19, %s1437_s13, %s1437_s13, %s1436_s17  }
  0x57   : > { %s995_s9 = scalar_lea.hbm %s1411_s0, 64  ;;  %p997_p10 = pneg %p1274_p13 }
  0x58   : > { %p996_p8 = scmp.ne.s32.totalorder %s1411_s0, %s995_s9  ;;  %p1002_p12 = scmp.lt.u32.totalorder %s995_s9, %s1411_s0 }
  0x5a   : > { %p998_p5 = pnand %p997_p10, %p996_p8 }
  0x5c   : > { %p999_p7 = pneg %p998_p5 }
  0x5e   : > { %p1004_p2 = pnand %p1002_p12, %p999_p7 }
  0x60   : > { %1007 = shalt.err (!%p1004_p2)
}
  0x61   : > { %s1008_s19 = scalar_lea.vmem %s1270_s11, 64  ;;  %p1016_p1 = scmp.lt.s32.totalorder %s1270_s11, %s1270_s11 }
  0x62   : > { %p1009_p6 = scmp.ne.s32.totalorder %s1270_s11, %s1008_s19  ;;  %p1017_p4 = scmp.lt.s32.totalorder %s1008_s19, %s1008_s19 }
  0x64   : > { %p1011_p0 = pnand %p1009_p6, %p997_p10  ;;  %p1018_p11 = por %p1017_p4, %p1016_p1 }
  0x66   : > { %p1012_p3 = pneg %p1011_p0 }
  0x68   : > { %p1019_p9 = pnand %p1018_p11, %p1012_p3 }
  0x6a   : > { %1022 = shalt.err (!%p1019_p9)
}
  0x6b   : > { %868 = dma.hbm_to_vmem [thread:$0]  (!%p1274_p13), %s1411_s0, 64, %s1270_s11, [#allocation3]  }
  0x6c   : > { %p1438_p8 = scmp.ne.s32.totalorder %s1433_s30, 0 }
  0x6d   : > { %p1439_p5 = scmp.eq.s32.totalorder (!%p1438_p8), %s1230_s21, 0 }
  0x6e   : > { %324 = sbr.rel (%p1438_p8) target bundleno = 644 (0x284), region = 48 }
  0x75   : > { %1068 = dma.done.wait (%p1439_p5), [#allocation3], 64   ;;  %p1440_p10 = pmov %p1439_p5 }
  0x76   : > { %s330_s14 = sand.u32 1, %s1230_s21   ;;  %s1334_s29 = sand.u32 1, %s1085_s25  }
  0x77   : > { %1070 = vsyncadd (%p1440_p10), [#allocation3], 4294967232  ;;  %s791_s20 = sshll.u32 %s1334_s29, 4  ;;  %s331_s16 = scalar_lea.sflag [#allocation6], %s330_s14 }
  0x78   : > { %s334_s17 = scalar_lea.vmem [#allocation5], %s791_s20  ;;  %p1441_p13 = scmp.ne.s32.totalorder %s1430_s23, 0 }
  0x7a   : > { %1072 = dma.done.wait (%p1441_p13), %s331_s16, 1280  }
  0x7b   : > { %1074 = vsyncadd (%p1441_p13), %s331_s16, 4294966016  ;;  %v1100_v0 = vmov 0.0   ;;  %vm1101_vm0 = vmmov 0   ;;  %v921_v1 = vld [vmem:[%s334_s17] sm:$0xff]   ;;  %v922_v2 = vld [vmem:[%s334_s17 + $0x8] sm:$0xff]   ;;  %vm428_vm1 = vcmask 261120   ;;  %v620_v50 = vlaneseq }
  0x7c   : > { %827 = vmatprep.subr.bf16.mxu0 %v1100_v0  ;;  %831 = vmatprep.mubr.msk.bf16.mxu0 %vm1101_vm0, %v1100_v0  ;;  %v404_v3 = vld [vmem:[#allocation2] sm:$0xf]  ;;  %s792_s30 = sshll.u32 %s1334_s29, 6  ;;  %p391_p7 = scmp.lt.s32.totalorder %s1230_s21, 1 }
  0x7d   : > { %835 = vmatprep.subr.bf16.mxu1 %v1100_v0  ;;  %851 = vmatprep.mubr.msk.bf16.mxu1 %vm1101_vm0, %v1100_v0  ;;  %s343_s11 = scalar_lea.vmem [#allocation7], %s792_s30  ;;  %s793_s17 = sshll.u32 %s1334_s29, 3  ;;  %v621_v51 = vand.u32 127, %v620_v50 }
  0x7e   : > { %828 = vmatpush3.bf16.msra.mxu0 %v921_v1  ;;  %v923_v4 = vld [vmem:[%s343_s11] sm:$0xff]   ;;  %v924_v5 = vld [vmem:[%s343_s11 + $0x8] sm:$0xff]   ;;  %v925_v6 = vld [vmem:[%s343_s11 + $0x10] sm:$0xff]   ;;  %s1344_s23 = scalar_select %p391_p7, %s1230_s21, 1 }
  0x7f   : > { %829 = vmatprep.subr.bf16.mxu0 %v1100_v0  ;;  %836 = vmatpush3.bf16.msra.mxu1 %v923_v4  ;;  %v926_v7 = vld [vmem:[%s343_s11 + $0x18] sm:$0xff]   ;;  %v927_v8 = vld [vmem:[%s343_s11 + $0x20] sm:$0xff]   ;;  %v928_v9 = vld [vmem:[%s343_s11 + $0x28] sm:$0xff]   ;;  %s810_s30 = sshll.u32 %s1230_s21, 7  ;;  %vm622_vm2 = vcmp.ge.s32.totalorder %v621_v51, 64  ;;  %s628_s12 = scalar_lea.sflag [#allocation4], %s1334_s29 }
  0x80   : > { %837 = vmatprep.subr.bf16.mxu1 %v1100_v0  ;;  %v929_v10 = vld [vmem:[%s343_s11 + $0x30] sm:$0xff]   ;;  %v930_v11 = vld [vmem:[%s343_s11 + $0x38] sm:$0xff]   ;;  %s393_s9 = scalar_lea.vmem %s1413_s2, %s1344_s23  ;;  %s396_s18 = scalar_lea.vmem %s1414_s3, %s1344_s23 }
  0x81   : > { %v794_v12 = vld [vmem:[%s393_s9] ss:$0 sm:$0xff]  ;;  %s399_s8 = scalar_lea.vmem %s1415_s4, %s1344_s23  ;;  %s402_s16 = scalar_lea.vmem %s1417_s6, %s1344_s23 }
  0x82   : > { %830 = vmatpush3.bf16.msra.mxu0 %v922_v2  ;;  %v798_v36 = vld [vmem:[%s396_s18] ss:$0 sm:$0xff]  ;;  %s390_s11 = scalar_lea.vmem [#allocation8], %s793_s17  ;;  %s1367_s9 = scalar_lea.hbm %s1418_s7, %s810_s30 }
  0x83   : > { %838 = vmatpush3.bf16.msra.mxu1 %v924_v5  ;;  %v799_v38 = vld [vmem:[%s399_s8] ss:$0 sm:$0xff]  ;;  %s641_s13 = sshll.u32 %s390_s11, 4  ;;  %p1442_p2 = scmp.ne.s32.totalorder %s1431_s10, 0  ;;  %s1369_s13 = int_to_ptr.vmem [resolvable:$true] %s641_s13 }
  0x84   : > { %839 = vmatprep.subr.bf16.mxu1 %v1100_v0  ;;  %v800_v43 = vld [vmem:[%s402_s16] ss:$0 sm:$0xff]  ;;  %s1023_s1 = scalar_lea.vmem %s1369_s13, 128  ;;  %s1102_s21 = smov [#allocation8]  }
  0x85   : > { %832 = vmatmul.mubr.msk.bf16.vlgmr.msra.gmra.mrb[0].mxu0 %vm428_vm1, %v404_v3  ;;  %p1024_p12 = scmp.ne.s32.totalorder %s1369_s13, %s1023_s1  ;;  %s1027_s18 = sshll.u32 %s1102_s21, 4  ;;  %s1028_s18 = int_to_ptr.vmem [resolvable:$false] %s1027_s18 }
  0x86   : > { %s1029_s19 = scalar_lea.vmem %s1028_s18, 256  ;;  %p1030_p3 = scmp.lt.s32.totalorder %s1369_s13, %s1028_s18 }
  0x87   : > { %840 = vmatpush3.bf16.msra.mxu1 %v925_v6  ;;  %p1025_p6 = pnand %p1024_p12, %p1442_p2  ;;  %p1031_p1 = scmp.lt.s32.totalorder %s1029_s19, %s1023_s1 }
  0x88   : > { %841 = vmatprep.subr.bf16.mxu1 %v1100_v0 }
  0x89   : > { %p1026_p0 = pneg %p1025_p6  ;;  %p1032_p4 = por %p1031_p1, %p1030_p3 }
  0x8b   : > { %842 = vmatpush3.bf16.msra.mxu1 %v926_v7  ;;  %p1033_p11 = pnand %p1032_p4, %p1026_p0 }
  0x8c   : > { %843 = vmatprep.subr.bf16.mxu1 %v1100_v0 }
  0x8f   : > { %844 = vmatpush3.bf16.msra.mxu1 %v927_v8 }
  0x90   : > { %845 = vmatprep.subr.bf16.mxu1 %v1100_v0 }
  0x93   : > { %846 = vmatpush3.bf16.msra.mxu1 %v928_v9 }
  0x94   : > { %847 = vmatprep.subr.bf16.mxu1 %v1100_v0 }
  0x97   : > { %848 = vmatpush3.bf16.msra.mxu1 %v929_v10 }
  0x98   : > { %849 = vmatprep.subr.bf16.mxu1 %v1100_v0 }
  0x9b   : > { %850 = vmatpush3.bf16.msra.mxu1 %v930_v11 }
 0x158   : > { %v466_v13 = vpop.f32.mrb[0].mxu0 }
 0x159   : > { %v467_v14 = vadd.f32 %v794_v12, %v466_v13  ;;  %v833_v15 = vpop.f32.mrb[1].mxu0 }
 0x15a   : > { %v469_v16 = vpop.f32.mrb[2].mxu0 }
 0x15b   : > { %v472_v17 = vrot.slane %v467_v14, 4  ;;  %v834_v18 = vpop.f32.mrb[3].mxu0 }
 0x15d   : > { %v473_v19 = vadd.f32 %v472_v17, %v467_v14 }
 0x15f   : > { %v474_v20 = vrot.slane %v473_v19, 2 }
 0x161   : > { %v475_v21 = vadd.f32 %v474_v20, %v473_v19 }
 0x163   : > { %v476_v22 = vrot.slane %v475_v21, 1 }
 0x165   : > { %v477_v23 = vadd.f32 %v476_v22, %v475_v21 }
 0x167   : > { %v478_v24 = vmul.f32 0.125, %v477_v23 }
 0x169   : > { %v479_v25 = vsub.f32 %v467_v14, %v478_v24 }
 0x16b   : > { %v480_v26 = vmul.f32 %v479_v25, %v479_v25 }
 0x16d   : > { %v481_v27 = vrot.slane %v480_v26, 4 }
 0x16f   : > { %v482_v28 = vadd.f32 %v481_v27, %v480_v26 }
 0x171   : > { %v483_v29 = vrot.slane %v482_v28, 2 }
 0x173   : > { %v484_v30 = vadd.f32 %v483_v29, %v482_v28 }
 0x175   : > { %v485_v31 = vrot.slane %v484_v30, 1 }
 0x177   : > { %v486_v32 = vadd.f32 %v485_v31, %v484_v30 }
 0x179   : > { %v487_v33 = vmul.f32 0.125, %v486_v32 }
 0x17b   : > { %v488_v34 = vadd.f32 1e-05, %v487_v33 }
 0x17d   : > { %931 = vrsqrt.f32 %v488_v34 }
 0x187   : > { %v932_v35 = vpop.eup %931 }
 0x188   : > { %v490_v37 = vmul.f32 %v932_v35, %v479_v25 }
 0x18a   : > { %v498_v39 = vmul.f32 %v798_v36, %v490_v37 }
 0x18c   : > { %v506_v40 = vadd.f32 %v799_v38, %v498_v39 }
 0x18e   : > { %v507_v41 = vmax.f32 %v506_v40, 0.0 }
 0x190   : > { %v508_v42 = vpack.c.bf16 %v507_v41, %v507_v41 }
 0x192   : > { %852 = vmatmul.mubr.bf16.vlgmr.msra.gmra.mrb[0].mxu1 %v508_v42 }
 0x265   : > { %v614_v44 = vpop.f32.mrb[0].mxu1 }
 0x266   : > { %v615_v45 = vadd.f32 %v800_v43, %v614_v44  ;;  %v853_v46 = vpop.f32.mrb[1].mxu1 }
 0x267   : > { %v617_v47 = vpop.f32.mrb[2].mxu1 }
 0x268   : > { %v623_v48 = vmul.f32 1.442695, %v615_v45  ;;  %v854_v49 = vpop.f32.mrb[3].mxu1 }
 0x26a   : > { %933 = vpow2.f32 %v623_v48 }
 0x274   : > { %v934_v52 = vpop.eup %933 }
 0x275   : > { %v625_v53 = vsel %vm622_vm2, %v934_v52, %v615_v45 }
 0x276   : > { %626 = vst [vmem:[%s390_s11] sm:$0xff] %v625_v53 }
 0x277   : > { %1036 = shalt.err (!%p1033_p11)
}
 0x278   : > { %s1037_s29 = scalar_lea.hbm %s1367_s9, 128  ;;  %s1041_s14 = scalar_lea.hbm %s1418_s7, 256 }
 0x279   : > { %p1038_p9 = scmp.ne.s32.totalorder %s1367_s9, %s1037_s29  ;;  %p1042_p10 = scmp.lt.u32.totalorder %s1367_s9, %s1418_s7 }
 0x27a   : > { %p1043_p13 = scmp.lt.u32.totalorder %s1041_s14, %s1037_s29  ;;  %p1045_p12 = scmp.lt.u32.totalorder %s1037_s29, %s1367_s9 }
 0x27b   : > { %p1039_p8 = pnand %p1038_p9, %p1442_p2 }
 0x27c   : > { %p1044_p7 = por %p1043_p13, %p1042_p10 }
 0x27d   : > { %p1040_p5 = pneg %p1039_p8 }
 0x27e   : > { %p1046_p6 = por %p1045_p12, %p1044_p7 }
 0x280   : > { %p1047_p0 = pnand %p1046_p6, %p1040_p5 }
 0x282   : > { %1050 = shalt.err (!%p1047_p0)
}
 0x283   : > { %863 = dma.vmem_to_hbm [thread:$0]  (%p1442_p2), %s1369_s13, 128, %s1367_s9, %s628_s12  }
 0x284 PF: > { %s653_s17 = sand.u32 1, %s1081_s24   ;;  %p1443_p3 = scmp.ne.s32.totalorder %s1432_s15, 0 }
 0x285   : > { %p1444_p1 = scmp.ge.s32.totalorder %s1093_s27, 2  ;;  %s654_s30 = scalar_lea.sflag [#allocation4], %s653_s17 }
 0x287   : > { %p877_p4 = pnand %p1444_p1, %p1443_p3 }
 0x289   : > { %1076 = dma.done.wait (!%p877_p4), %s654_s30, 128  }
 0x28a   : > { %1078 = vsyncadd (!%p877_p4), %s654_s30, 4294967168  ;;  %s1445_s11 = sld [smem:[#allocation12_spill]]  ;;  %p21_p11 = scmp.ge.s32.totalorder %s1164_s28, 4  }
 0x28b   : > { %s1446_s24 = smov %s1085_s25  ;;  %s1447_s25 = smov %s1089_s26 }
 0x28c   : > { %s1449_s27 = smov %s1164_s28  ;;  %23 = sbr.rel (!%p21_p11) target bundleno = 9 (0x9), region = 121 }
 0x290   : > { %s1448_s26 = smov %s1445_s11 }
 0x293   :  { %659 = vsyncpa [#allocation3], 1 }
 0x294   :  { %661 = vsyncpa [#allocation3 + $0x1], 1 }
 0x295   :  { %662 = vsyncpa [#allocation6], 1 }
 0x296   :  { %664 = vsyncpa [#allocation6 + $0x1], 1 }
 0x297   :  { %665 = vsyncpa [#allocation4], 1 }
 0x298   :  { %667 = vsyncpa [#allocation4 + $0x1], 1 }

</bundles_post_ra>
